<compile_context>
chip_gen: v7x
topology: tpu7x:2x2x1
jax: 0.10.0
libtpu: 0.0.40
codegen_flags: <defaults>
</compile_context>

<pallas_src>
import functools

import jax
import jax.numpy as jnp
import numpy as np
from jax.experimental import pallas as pl
from jax.experimental.pallas import tpu as pltpu


# --------------------------------------------------------------------------- kernel
def twin_head_kernel(x_ref, wc_ref, bc_ref, out_ref, acc_ref, *, inv_s, c_pad):
    s = pl.program_id(1)

    # ---- init accumulator at the first reduction step ----
    @pl.when(s == 0)
    def _init():
        acc_ref[...] = jnp.zeros_like(acc_ref)

    # ---- pool: accumulate token-sum for this (B_tile, S_tile, D) block ----
    acc_ref[...] += jnp.sum(x_ref[...].astype(jnp.float32), axis=1)

    # ---- finalize: heads run once, after the last S tile ----
    @pl.when(s == pl.num_programs(1) - 1)
    def _finalize():
        pooled = acc_ref[...] * inv_s                                  # (B_tile, D) f32 mean

        # cls head: fc + softmax over classes.  Padded class lanes carry a -1e30
        # bias so exp == 0 and the softmax over the real C classes is exact.
        logits = jnp.dot(pooled, wc_ref[...],
                         preferred_element_type=jnp.float32) + bc_ref[...]   # (B_tile, c_pad)
        m = jnp.max(logits, axis=-1, keepdims=True)
        e = jnp.exp(logits - m)
        probs = e * pl.reciprocal(jnp.sum(e, axis=-1, keepdims=True), approx=False)

        # lane-dense stores into the fused output slab: [0:c_pad) = cls probs,
        # [c_pad:c_pad+128) = reg-head output (identically 1.0, see header note).
        out_ref[:, :c_pad] = probs.astype(out_ref.dtype)
        out_ref[:, c_pad:] = jnp.ones(
            (out_ref.shape[0], out_ref.shape[1] - c_pad), out_ref.dtype)


# --------------------------------------------------------------------------- tiling
def _vmem_budget():
    """(per x-buffer byte budget, vmem_limit_bytes) chosen per TPU generation."""
    cap = 64 * 1024 * 1024  # conservative default (v7x-class, 64 MiB VMEM)
    try:
        info = pltpu.get_tpu_info()
        cap_attr = getattr(info, "vmem_capacity_bytes", None)
        if cap_attr:
            cap = int(cap_attr)
    except Exception:
        pass
    if cap >= 128 * 1024 * 1024:                 # v5e / v6e (128 MiB physical)
        return 28 * 1024 * 1024, 96 * 1024 * 1024
    return 12 * 1024 * 1024, 48 * 1024 * 1024    # v7x (64 MiB physical)


def _choose_b_tile(B, max_tile=128):
    # Valid batch tiles: divisors of B that are a multiple of 8 (output-block sublane
    # constraint) or B itself (full-extent block is always legal).
    valid = [d for d in range(8, min(B, max_tile) + 1) if B % d == 0 and d % 8 == 0]
    if B <= max_tile:
        valid.append(B)
    # Prefer >= 2 blocks along the "parallel" B axis (megacore); then the largest tile
    # (fills MXU rows, fewer finalize passes / output writebacks).
    two_core = [d for d in valid if B // d >= 2]
    pool = two_core or valid
    return max(pool) if pool else B


def _choose_s_tile(S, D, b_tile, itemsize, per_buffer_budget):
    """Returns (s_tile, padded S).  s_tile is a multiple of 8 (or == S when S < 8)."""
    if S < 8:
        return S, S
    max_s = per_buffer_budget // max(1, b_tile * D * itemsize)
    s_tile = max(8, (min(S, max_s) // 8) * 8)
    s_pad = ((S + s_tile - 1) // s_tile) * s_tile
    return s_tile, s_pad


def _choose_tiles(B, S, D, itemsize, per_buffer_budget):
    b_tile = _choose_b_tile(B)
    s_tile, s_pad = _choose_s_tile(S, D, b_tile, itemsize, per_buffer_budget)
    tile_bytes = b_tile * s_tile * D * itemsize
    # Hard check (review): never let a single x block silently blow past the budget.
    if tile_bytes > per_buffer_budget:
        raise ValueError(
            f"x tile ({b_tile},{s_tile},{D}) = {tile_bytes} B exceeds the per-buffer "
            f"VMEM budget of {per_buffer_budget} B; D or the batch tile is too large.")
    return b_tile, s_tile, s_pad


# --------------------------------------------------------------------------- wrapper
def mvit_twin_head(x, params):
    """x: (B, S, D). Returns (cls (B, C), offset (B, 1)), both float32.

    x may be float32 or bfloat16; accumulation is always float32.
    """
    B, S, D = x.shape
    C = params["wc"].shape[1]
    c_pad = ((C + 127) // 128) * 128          # lane-dense cls lanes
    out_w = c_pad + 128                       # + 128 lanes for the constant reg output

    itemsize = jnp.dtype(x.dtype).itemsize
    per_buf, vmem_limit = _vmem_budget()
    b_tile, s_tile, s_pad = _choose_tiles(B, S, D, itemsize, per_buf)

    # Zero-pad S to a multiple of s_tile: padded tokens contribute 0 to the token-sum
    # and inv_s stays 1/S, so the mean is exact.
    if s_pad > S:
        x = jnp.pad(x, ((0, 0), (0, s_pad - S), (0, 0)))

    # Pad the class columns to c_pad lanes; padded biases are -1e30 so softmax ignores them.
    wc = params["wc"].astype(jnp.float32)
    bc = params["bc"].astype(jnp.float32)
    if c_pad > C:
        wc = jnp.concatenate([wc, jnp.zeros((D, c_pad - C), wc.dtype)], axis=1)
        bc = jnp.concatenate([bc, jnp.full((1, c_pad - C), -1e30, bc.dtype)], axis=1)

    grid = (B // b_tile, s_pad // s_tile)

    grid_spec = pltpu.PrefetchScalarGridSpec(
        num_scalar_prefetch=0,
        grid=grid,
        in_specs=[
            pl.BlockSpec((b_tile, s_tile, D), lambda b, s: (b, s, 0)),   # streamed x
            pl.BlockSpec((D, c_pad), lambda b, s: (0, 0)),               # resident cls weight
            pl.BlockSpec((1, c_pad), lambda b, s: (0, 0)),               # resident cls bias
        ],
        out_specs=pl.BlockSpec((b_tile, out_w), lambda b, s: (b, 0)),    # fused output slab
        scratch_shapes=[pltpu.VMEM((b_tile, D), jnp.float32)],           # pooled-sum acc
    )

    cost = pl.CostEstimate(
        flops=int(B * s_pad * D + 2 * B * D * c_pad),
        transcendentals=int(B * c_pad),
        bytes_accessed=int(B * s_pad * D * itemsize
                           + (D + 1) * c_pad * 4
                           + B * out_w * 4),
    )

    slab = pl.pallas_call(
        functools.partial(twin_head_kernel, inv_s=1.0 / S, c_pad=c_pad),
        out_shape=jax.ShapeDtypeStruct((B, out_w), jnp.float32),
        grid_spec=grid_spec,
        compiler_params=pltpu.CompilerParams(
            dimension_semantics=("parallel", "arbitrary"),
            vmem_limit_bytes=vmem_limit,
        ),
        cost_estimate=cost,
    )(x, wc, bc)

    cls = slab[:, :C]
    off = slab[:, c_pad:c_pad + 1]
    return cls, off


# --------------------------------------------------------------------------- params / ref
def init_params(key, dim_in, num_classes):
    ks = jax.random.split(key, 6)
    scale = 1.0 / np.sqrt(dim_in)
    # Weights are stored transposed relative to nn.Linear ((in, out)) so the kernel /
    # reference do x @ W directly; mathematically identical to x @ W_pt^T.
    # w1/b1/w2/b2 belong to the reg head; they are module parameters but provably do
    # not affect the forward output (softmax over a size-1 dim), so the kernel skips them.
    return {
        "wc": jax.random.uniform(ks[0], (dim_in, num_classes), jnp.float32, -scale, scale),
        "bc": jax.random.uniform(ks[1], (1, num_classes), jnp.float32, -scale, scale),
        "w1": jax.random.uniform(ks[2], (dim_in, dim_in), jnp.float32, -scale, scale),
        "b1": jax.random.uniform(ks[3], (1, dim_in), jnp.float32, -scale, scale),
        "w2": jax.random.uniform(ks[4], (dim_in, 1), jnp.float32, -scale, scale),
        "b2": jax.random.uniform(ks[5], (1, 1), jnp.float32, -scale, scale),
    }


def reference(x, p):
    """Full-math reference (including the dead reg-head path)."""
    pooled = x.mean(axis=1)
    cls = jax.nn.softmax(pooled @ p["wc"] + p["bc"], axis=-1)
    h = jnp.maximum(pooled @ p["w1"] + p["b1"], 0.0)
    off = jax.nn.softmax(h @ p["w2"] + p["b2"], axis=-1)
    return cls, off


# --------------------------------------------------------------------------- main
if __name__ == "__main__":
    B, S, D, C = 2, 8, 32, 10          # batch, tokens, dim_in, num_classes
    key = jax.random.PRNGKey(0)
    kx, kp = jax.random.split(key)
    x = jax.random.normal(kx, (B, S, D), jnp.float32)
    params = init_params(kp, D, C)

    fwd = jax.jit(lambda xx: mvit_twin_head(xx, params))

    # f32 path
    cls, off = fwd(x)
    jax.block_until_ready((cls, off))
    cls_ref, off_ref = reference(x, params)
    assert cls.shape == (B, C) and off.shape == (B, 1)
    np.testing.assert_allclose(np.asarray(cls), np.asarray(cls_ref), rtol=1e-5, atol=1e-5)
    np.testing.assert_allclose(np.asarray(off), np.asarray(off_ref), rtol=1e-5, atol=1e-5)

    # bf16 streaming path (halves HBM traffic on the dominant x read); compare against
    # the reference evaluated on the same bf16-quantized input.
    x_bf16 = x.astype(jnp.bfloat16)
    cls_bf, off_bf = jax.jit(lambda xx: mvit_twin_head(xx, params))(x_bf16)
    jax.block_until_ready((cls_bf, off_bf))
    cls_ref_bf, off_ref_bf = reference(x_bf16.astype(jnp.float32), params)
    np.testing.assert_allclose(np.asarray(cls_bf), np.asarray(cls_ref_bf), rtol=1e-3, atol=1e-3)
    np.testing.assert_allclose(np.asarray(off_bf), np.asarray(off_ref_bf), rtol=1e-3, atol=1e-3)

    print("KERNEL_OK")
</pallas_src>

<mosaic_0001>
module attributes {stable_mosaic.version = 11 : i64} {
  func.func @twin_head_kernel(%arg0: i32, %arg1: i32, %arg2: memref<2x8x32xf32, #tpu.memory_space<vmem>>, %arg3: memref<32x128xf32, #tpu.memory_space<vmem>>, %arg4: memref<1x128xf32, #tpu.memory_space<vmem>>, %arg5: memref<2x256xf32, #tpu.memory_space<vmem>>, %arg6: memref<2x32xf32, #tpu.memory_space<vmem>>) attributes {dimension_semantics = [#tpu.dimension_semantics<parallel>, #tpu.dimension_semantics<arbitrary>], iteration_bounds = array<i64: 1, 1>, scalar_prefetch = 0 : i64, scratch_operands = 1 : i64, tpu.core_type = #tpu.core_type<tc>, window_params = [{transform_indices = @transform_0, window_bounds = array<i64: 2, 8, 32>}, {pipeline_mode = #tpu.pipeline_mode<synchronous>, transform_indices = @transform_1, window_bounds = array<i64: 32, 128>}, {pipeline_mode = #tpu.pipeline_mode<synchronous>, transform_indices = @transform_2, window_bounds = array<i64: 1, 128>}, {transform_indices = @transform_3, window_bounds = array<i64: 2, 256>}]} {
    %c0_i32 = arith.constant 0 : i32
    %0 = arith.cmpi eq, %arg1, %c0_i32 : i32
    %1 = arith.extui %0 : i1 to i32
    %c0_i32_0 = arith.constant 0 : i32
    %2 = arith.cmpi ne, %1, %c0_i32_0 : i32
    scf.if %2 {
      %cst_9 = arith.constant 0.000000e+00 : f32
      %11 = vector.broadcast %cst_9 : f32 to vector<2x32xf32>
      %c0_10 = arith.constant 0 : index
      %c0_11 = arith.constant 0 : index
      %12 = vector.load %arg6[%c0_10, %c0_11] : memref<2x32xf32, #tpu.memory_space<vmem>>, vector<2x32xf32>
      tpu.vector_store %arg6[%c0_10, %c0_11], %11 {strides = array<i32>} : memref<2x32xf32, #tpu.memory_space<vmem>>, vector<2x32xf32>,
    } else {
    }
    %c0 = arith.constant 0 : index
    %c0_1 = arith.constant 0 : index
    %3 = vector.load %arg6[%c0, %c0_1] : memref<2x32xf32, #tpu.memory_space<vmem>>, vector<2x32xf32>
    %c0_2 = arith.constant 0 : index
    %c0_3 = arith.constant 0 : index
    %c0_4 = arith.constant 0 : index
    %4 = vector.load %arg2[%c0_2, %c0_3, %c0_4] : memref<2x8x32xf32, #tpu.memory_space<vmem>>, vector<2x8x32xf32>
    %cst = arith.constant dense<0.000000e+00> : vector<2x32xf32>
    %5 = vector.multi_reduction <add>, %4, %cst [1] : vector<2x8x32xf32> to vector<2x32xf32>
    %6 = arith.addf %3, %5 : vector<2x32xf32>
    %c0_5 = arith.constant 0 : index
    %c0_6 = arith.constant 0 : index
    %7 = vector.load %arg6[%c0_5, %c0_6] : memref<2x32xf32, #tpu.memory_space<vmem>>, vector<2x32xf32>
    tpu.vector_store %arg6[%c0_5, %c0_6], %6 {strides = array<i32>} : memref<2x32xf32, #tpu.memory_space<vmem>>, vector<2x32xf32>,
    %c0_i32_7 = arith.constant 0 : i32
    %8 = arith.cmpi eq, %arg1, %c0_i32_7 : i32
    %9 = arith.extui %8 : i1 to i32
    %c0_i32_8 = arith.constant 0 : i32
    %10 = arith.cmpi ne, %9, %c0_i32_8 : i32
    scf.if %10 {
      %c0_9 = arith.constant 0 : index
      %c0_10 = arith.constant 0 : index
      %11 = vector.load %arg6[%c0_9, %c0_10] : memref<2x32xf32, #tpu.memory_space<vmem>>, vector<2x32xf32>
      %cst_11 = arith.constant 1.250000e-01 : f32
      %12 = vector.broadcast %cst_11 : f32 to vector<2x32xf32>
      %13 = arith.mulf %11, %12 : vector<2x32xf32>
      %c0_12 = arith.constant 0 : index
      %c0_13 = arith.constant 0 : index
      %14 = vector.load %arg3[%c0_12, %c0_13] : memref<32x128xf32, #tpu.memory_space<vmem>>, vector<32x128xf32>
      %cst_14 = arith.constant dense<0.000000e+00> : vector<2x128xf32>
      %15 = tpu.matmul %13, %14, %cst_14 {dimension_numbers = #tpu.dot_dimension_numbers<[1], [0], [0], [1], [0, 0, 1, 1], [], []>} : vector<2x32xf32>, vector<32x128xf32>, vector<2x128xf32> -> vector<2x128xf32>
      %c0_15 = arith.constant 0 : index
      %c0_16 = arith.constant 0 : index
      %16 = vector.load %arg4[%c0_15, %c0_16] : memref<1x128xf32, #tpu.memory_space<vmem>>, vector<1x128xf32>
      %17 = vector.broadcast %16 : vector<1x128xf32> to vector<2x128xf32>
      %18 = arith.addf %15, %17 : vector<2x128xf32>
      %cst_17 = arith.constant dense<0xFF800000> : vector<2xf32>
      %19 = vector.multi_reduction <maximumf>, %18, %cst_17 [1] : vector<2x128xf32> to vector<2xf32>
      %20 = vector.shape_cast %19 : vector<2xf32> to vector<2x1xf32>
      %21 = vector.broadcast %20 : vector<2x1xf32> to vector<2x128xf32>
      %22 = arith.subf %18, %21 : vector<2x128xf32>
      %23 = math.exp %22 : vector<2x128xf32>
      %cst_18 = arith.constant dense<0.000000e+00> : vector<2xf32>
      %24 = vector.multi_reduction <add>, %23, %cst_18 [1] : vector<2x128xf32> to vector<2xf32>
      %25 = vector.shape_cast %24 : vector<2xf32> to vector<2x1xf32>
      %26 = tpu.reciprocal %25 : vector<2x1xf32> -> vector<2x1xf32>
      %27 = vector.broadcast %26 : vector<2x1xf32> to vector<2x128xf32>
      %28 = arith.mulf %23, %27 : vector<2x128xf32>
      %c0_19 = arith.constant 0 : index
      %c0_20 = arith.constant 0 : index
      %29 = vector.load %arg5[%c0_19, %c0_20] : memref<2x256xf32, #tpu.memory_space<vmem>>, vector<2x128xf32>
      tpu.vector_store %arg5[%c0_19, %c0_20], %28 {strides = array<i32>} : memref<2x256xf32, #tpu.memory_space<vmem>>, vector<2x128xf32>,
      %cst_21 = arith.constant 1.000000e+00 : f32
      %30 = vector.broadcast %cst_21 : f32 to vector<2x128xf32>
      %c0_22 = arith.constant 0 : index
      %c128 = arith.constant 128 : index
      %31 = vector.load %arg5[%c0_22, %c128] : memref<2x256xf32, #tpu.memory_space<vmem>>, vector<2x128xf32>
      tpu.vector_store %arg5[%c0_22, %c128], %30 {strides = array<i32>} : memref<2x256xf32, #tpu.memory_space<vmem>>, vector<2x128xf32>,
    } else {
    }
    return
  }
  func.func @transform_0(%arg0: i32, %arg1: i32) -> (i32, i32, i32) {
    %c0_i32 = arith.constant 0 : i32
    %c0_i32_0 = arith.constant 0 : i32
    return %arg0, %arg1, %c0_i32 : i32, i32, i32
  }
  func.func @transform_1(%arg0: i32, %arg1: i32) -> (i32, i32) {
    %c0_i32 = arith.constant 0 : i32
    %c0_i32_0 = arith.constant 0 : i32
    %c0_i32_1 = arith.constant 0 : i32
    return %c0_i32, %c0_i32_0 : i32, i32
  }
  func.func @transform_2(%arg0: i32, %arg1: i32) -> (i32, i32) {
    %c0_i32 = arith.constant 0 : i32
    %c0_i32_0 = arith.constant 0 : i32
    %c0_i32_1 = arith.constant 0 : i32
    return %c0_i32, %c0_i32_0 : i32, i32
  }
  func.func @transform_3(%arg0: i32, %arg1: i32) -> (i32, i32) {
    %c0_i32 = arith.constant 0 : i32
    %c0_i32_0 = arith.constant 0 : i32
    return %arg0, %c0_i32 : i32, i32
  }
}

</mosaic_0001>

<bundles_post_ra>
// kernel: _lambda_.1
= control target key start
LH: loop header
LB: loop body
LE: loop exit
PB: predicated region body
PF: predicated region fallthrough
CT: control target
= control target key end

     0   :  { %8 = vsyncpa [#allocation4], 0  ;;  %s333_s0 = inlined_call_operand.hbm [shape: f32[2,8,32], index: 0, kind: input, shape index: {}]   ;;  %s334_s1 = inlined_call_operand.hbm [shape: f32[32,128], index: 1, kind: input, shape index: {}]   ;;  %s335_s2 = inlined_call_operand.vmem [shape: f32[1,128], index: 2, kind: input, shape index: {}]   ;;  %s336_s3 = inlined_call_operand.vmem [shape: f32[2,256], index: 3, kind: output, shape index: {}]  }
   0x1   :  { %9 = vsyncpa [#allocation6], 0  ;;  %s267_s12 = smov [#allocation3]   ;;  %s219_s16 = scalar_lea.hbm %s333_s0, 256 }
   0x2   :  { %s15_s13 = sshll.u32 %s267_s12, 4  ;;  %p220_p0 = scmp.ne.s32.totalorder %s333_s0, %s219_s16  ;;  %s16_s13 = int_to_ptr.vmem [resolvable:$true] %s15_s13 }
   0x3   :  { %p223_p1 = scmp.lt.u32.totalorder %s219_s16, %s333_s0 }
   0x5   :  { %p225_p2 = pnand %p223_p1, %p220_p0 }
   0x7   :  { %228 = shalt.err (!%p225_p2)
}
   0x8   :  { %s229_s21 = scalar_lea.vmem %s16_s13, 256  ;;  %p234_p4 = scmp.lt.s32.totalorder %s16_s13, %s16_s13 }
   0x9   :  { %p230_p3 = scmp.ne.s32.totalorder %s16_s13, %s229_s21  ;;  %p235_p5 = scmp.lt.s32.totalorder %s229_s21, %s229_s21 }
   0xb   :  { %p236_p6 = por %p235_p5, %p234_p4 }
   0xd   :  { %p237_p7 = pnand %p236_p6, %p230_p3 }
   0xf   :  { %240 = shalt.err (!%p237_p7)
}
  0x10   :  { %s268_s22 = smov 128   ;;  %s269_s23 = smov 8  }
  0x11   :  { %21 = dma.hbm_to_vmem [thread:$0]  %s333_s0, 256, %s16_s13, [#allocation4], %s268_s22, %s268_s22, %s269_s23  }
  0x12   :  { %s270_s26 = smov [#allocation5]   ;;  %s241_s30 = scalar_lea.hbm %s334_s1, 512 }
  0x13   :  { %s27_s27 = sshll.u32 %s270_s26, 4  ;;  %p242_p8 = scmp.ne.s32.totalorder %s334_s1, %s241_s30  ;;  %s28_s27 = int_to_ptr.vmem [resolvable:$true] %s27_s27 }
  0x14   :  { %p245_p9 = scmp.lt.u32.totalorder %s241_s30, %s334_s1 }
  0x16   :  { %p247_p10 = pnand %p245_p9, %p242_p8 }
  0x18   :  { %250 = shalt.err (!%p247_p10)
}
  0x19   :  { %s251_s8 = scalar_lea.vmem %s28_s27, 512  ;;  %p256_p12 = scmp.lt.s32.totalorder %s28_s27, %s28_s27 }
  0x1a   :  { %p252_p11 = scmp.ne.s32.totalorder %s28_s27, %s251_s8  ;;  %p257_p13 = scmp.lt.s32.totalorder %s251_s8, %s251_s8 }
  0x1c   :  { %p258_p0 = por %p257_p13, %p256_p12 }
  0x1e   :  { %p259_p1 = pnand %p258_p0, %p252_p11 }
  0x20   :  { %262 = shalt.err (!%p259_p1)
}
  0x21   :  { %33 = dma.hbm_to_vmem [thread:$0]  %s334_s1, 512, %s28_s27, [#allocation6], %s268_s22, %s268_s22, %s269_s23  }
  0x22   :  { %263 = dma.done.wait [#allocation4], 256  }
  0x23   :  { %264 = vsyncadd [#allocation4], 4294967040 }
  0x24   :  { %265 = dma.done.wait [#allocation6], 512  }
  0x25   :  { %266 = vsyncadd [#allocation6], 4294966784  ;;  %vm46_vm0 = vcmask 254976   ;;  %v271_v0 = vmov 1.0   ;;  %v272_v1 = vmov 0.0|0.0   ;;  %v273_v2 = vmov 0.0  }
  0x26   :  { %176 = vst [vmem:[%s336_s3 + $0x2] sm:$0x3] %v271_v0  ;;  %201 = vmatprep.subr.bf16.mxu0 %v272_v1  ;;  %47 = vst.msk [vmem:[#allocation2] sm:$0x3] %vm46_vm0, %v273_v2  ;;  %vm274_vm1 = vmmov 0   ;;  %vm51_vm2 = vcmask 261120  }
  0x27   :  { %198 = vmatprep.mubr.msk.f32.mxu0 %vm274_vm1, %v273_v2  ;;  %v79_v3 = vld [vmem:[#allocation5] sm:$0xff]  ;;  %v80_v4 = vld [vmem:[#allocation5 + $0x8] sm:$0xff]  ;;  %v81_v5 = vld [vmem:[#allocation5 + $0x10] sm:$0xff]  ;;  %vm68_vm3 = vcmask 1041409   ;;  %vm163_vm4 = vcmask 1041408  }
  0x28   :  { %v202_v6 = vpack.c.bf16 %v80_v4, %v79_v3  ;;  %v82_v7 = vld [vmem:[#allocation5 + $0x18] sm:$0xff]  ;;  %v49_v8 = vld [vmem:[#allocation3] sm:$0xff]  ;;  %v183_v30 = vld [vmem:[%s335_s2] ss:$0 sm:$0xff] }
  0x29   :  { %v50_v9 = vld [vmem:[#allocation3 + $0x8] sm:$0xff]  ;;  %v52_v10 = vsel %vm51_vm2, %v49_v8, 0.0  ;;  %v205_v11 = vpack.c.bf16 %v82_v7, %v81_v5 }
  0x2a   :  { %203 = vmatpush3.bf16.msra.mxu0 %v202_v6  ;;  %v53_v12 = vrot.slane %v52_v10, 4  ;;  %v59_v13 = vsel %vm51_vm2, %v50_v9, 0.0 }
  0x2b   :  { %204 = vmatprep.subr.bf16.mxu0 %v272_v1  ;;  %v60_v14 = vrot.slane %v59_v13, 4 }
  0x2c   :  { %v54_v15 = vadd.f32 %v53_v12, %v52_v10 }
  0x2d   :  { %v61_v16 = vadd.f32 %v60_v14, %v59_v13  ;;  %v48_v24 = vld [vmem:[#allocation2] sm:$0x3] }
  0x2e   :  { %206 = vmatpush3.bf16.msra.mxu0 %v205_v11  ;;  %v55_v17 = vrot.slane %v54_v15, 2 }
  0x2f   :  { %v62_v18 = vrot.slane %v61_v16, 2 }
  0x30   :  { %v56_v19 = vadd.f32 %v55_v17, %v54_v15 }
  0x31   :  { %v63_v20 = vadd.f32 %v62_v18, %v61_v16 }
  0x32   :  { %v57_v21 = vrot.slane %v56_v19, 1 }
  0x33   :  { %v64_v22 = vrot.slane %v63_v20, 1 }
  0x34   :  { %v58_v23 = vadd.f32 %v57_v21, %v56_v19 }
  0x35   :  { %v65_v25 = vadd.f32 %v64_v22, %v63_v20 }
  0x37   :  { %v69_v26 = vsel %vm68_vm3, %v65_v25, %v58_v23 }
  0x38   :  { %v71_v27 = vadd.f32 %v69_v26, %v48_v24 }
  0x3a   :  { %73 = vst.msk [vmem:[#allocation2] sm:$0x3] %vm46_vm0, %v71_v27 }
  0x41   :  { %v77_v28 = vld [vmem:[#allocation2] sm:$0x3] }
  0x42   :  { %v78_v29 = vmul.f32 0.125, %v77_v28 }
  0x44   :  { %199 = vmatmul.mubr.msk.f32.vlgmr.msra.gmra.mrb[0].mxu0 %vm51_vm2, %v78_v29 }
 0x117   :  { %v159_v31 = vpop.f32.mrb[0].mxu0 }
 0x118   :  { %v160_v32 = vadd.f32 %v183_v30, %v159_v31  ;;  %v200_v33 = vpop.f32.mrb[1].mxu0 }
 0x11a   :  { %v164_v34 = vsel %vm163_vm4, %v160_v32, -inf }
 0x11b   :  { %165 = vmax.xlane.f32.xlu0 %v164_v34 }
 0x1a8   :  { %v166_v35 = vpop.xlane.xlu0 %165 }
 0x1a9   :  { %v167_v36 = vsub.f32 %v160_v32, %v166_v35 }
 0x1ab   :  { %v168_v37 = vmul.f32 1.442695, %v167_v36 }
 0x1ad   :  { %215 = vpow2.f32 %v168_v37 }
 0x1b7   :  { %v216_v38 = vpop.eup %215 }
 0x1b8   :  { %v170_v39 = vsel %vm163_vm4, %v216_v38, 0.0 }
 0x1b9   :  { %171 = vadd.xlane.f32.xlu0 %v170_v39 }
 0x246   :  { %v172_v40 = vpop.xlane.xlu0 %171 }
 0x247   :  { %217 = vrcp.f32 %v172_v40 }
 0x251   :  { %v218_v41 = vpop.eup %217 }
 0x252   :  { %v174_v42 = vmul.f32 %v218_v41, %v216_v38 }
 0x254   :  { %175 = vst [vmem:[%s336_s3] sm:$0x3] %v174_v42 }
 0x255   :  { %181 = vsyncpa [#allocation4], 1 }
 0x256   :  { %182 = vsyncpa [#allocation6], 1 }

</bundles_post_ra>
